<compile_context>
chip_gen: v5e
topology: v5e:2x2
jax: 0.10.0
libtpu: 0.0.40
codegen_flags: <defaults>
</compile_context>

<pallas_src>
import math

import jax
import jax.numpy as jnp
from jax import lax
from jax.experimental import pallas as pl
from jax.experimental.pallas import tpu as pltpu

# ---------------- config (synthetic, small) ----------------
D_MODEL = 32
N_HEAD = 4
D_K = D_MODEL // N_HEAD
DROPOUT = 0.1  # unused at inference (identity)
SCALE = 1.0 / math.sqrt(D_K)


# ---------------- fused Pallas kernel (one grid point == one batch element) ----------------
def _mha_kernel(x_ref, wqkv_ref, bqkv_ref, wfc_ref, bfc_ref, mask_ref, o_ref):
    """Fused MHA forward for one batch element.

    x_ref:    (l_x, D_MODEL)        rows of this batch element
    wqkv_ref: (D_MODEL, 3*D_MODEL)  [SCALE*Wq | Wk | Wv], (d_in, d_out)
    bqkv_ref: (1, 3*D_MODEL)        [SCALE*bq | bk | bv]
    wfc_ref:  (D_MODEL, D_MODEL)    fc weight, (d_in, d_out)
    bfc_ref:  (1, D_MODEL)
    mask_ref: (1, 1, l_x)           key mask of this batch element (1.0 = masked)
    o_ref:    (l_x, D_MODEL)
    """
    # --- fused Q/K/V projection: one MXU pass (scale pre-folded into the Q columns) ---
    qkv = (
        jnp.dot(x_ref[...], wqkv_ref[...], preferred_element_type=jnp.float32)
        + bqkv_ref[...]
    )  # (l_x, 3*D_MODEL)

    # --- key mask, kept un-broadcast: (1, l_x) bool, broadcasts over the query dim ---
    key_masked = mask_ref[0] != 0.0

    # --- per-head attention, accumulated straight into the fc matmul (no head concat) ---
    acc = None
    for h in range(N_HEAD):
        q = qkv[:, h * D_K:(h + 1) * D_K]                                   # (l_x, D_K)
        k = qkv[:, D_MODEL + h * D_K:D_MODEL + (h + 1) * D_K]               # (l_x, D_K)
        v = qkv[:, 2 * D_MODEL + h * D_K:2 * D_MODEL + (h + 1) * D_K]       # (l_x, D_K)

        # scores = q @ k^T (contract last dims of both; no explicit transpose)
        s = lax.dot_general(q, k, (((1,), (1,)), ((), ())),
                            preferred_element_type=jnp.float32)             # (l_x, l_x)
        # mask_logits(t, m) == where(m != 0, -1e30, t) for a 0/1 mask
        s = jnp.where(key_masked, -1e30, s)

        # numerically stable softmax along keys (f32; exp/recip on the EUP)
        s = s - jnp.max(s, axis=-1, keepdims=True)
        p = jnp.exp(s)
        p = p * pl.reciprocal(jnp.sum(p, axis=-1, keepdims=True), approx=True)

        o_h = jnp.dot(p, v, preferred_element_type=jnp.float32)             # (l_x, D_K)

        # per-head slice of the output projection: sum over heads == full fc matmul
        contrib = jnp.dot(o_h, wfc_ref[h * D_K:(h + 1) * D_K, :],
                          preferred_element_type=jnp.float32)               # (l_x, D_MODEL)
        acc = contrib if acc is None else acc + contrib

    # --- output bias (dropout = identity in eval mode); single contiguous store ---
    o_ref[...] = acc + bfc_ref[...]


# ---------------- params & one-time weight preparation ----------------
def init_params(key):
    ks = jax.random.split(key, 8)

    def lin(kw, kb):
        # PyTorch nn.Linear stores W as (d_out, d_in); keep that convention.
        w = jax.random.normal(kw, (D_MODEL, D_MODEL), jnp.float32) * 0.05
        b = jax.random.normal(kb, (D_MODEL,), jnp.float32) * 0.05
        return w, b

    return {
        "q": lin(ks[0], ks[1]),
        "k": lin(ks[2], ks[3]),
        "v": lin(ks[4], ks[5]),
        "fc": lin(ks[6], ks[7]),
    }


def prepare_weights(params):
    """Hoisted out of the jit'd call path: build fused / transposed weights ONCE.

    SCALE (= 1/sqrt(d_k)) is folded into the Q weight & bias, since
    SCALE * (x Wq^T + bq) @ k^T == (x Wq^T + bq) @ k^T * SCALE.
    """
    wq, bq = params["q"]
    wk, bk = params["k"]
    wv, bv = params["v"]
    wfc, bfc = params["fc"]
    w_qkv = jnp.concatenate([wq.T * SCALE, wk.T, wv.T], axis=1)          # (D, 3D)
    b_qkv = jnp.concatenate([bq * SCALE, bk, bv]).reshape(1, 3 * D_MODEL)
    return {
        "w_qkv": w_qkv,
        "b_qkv": b_qkv,
        "w_fc": wfc.T,                      # (d_in, d_out)
        "b_fc": bfc.reshape(1, D_MODEL),
    }


# ---------------- module wrapper ----------------
@jax.jit
def multi_head_attention(prep, x, mask):
    """x: (bs, l_x, d_model) float32; mask: (bs, l_x) float32 (1 = masked)."""
    bs, l_x, _ = x.shape
    n = bs * l_x
    x2d = x.reshape(n, D_MODEL)
    mask3 = mask.reshape(bs, 1, l_x)

    out2d = pl.pallas_call(
        _mha_kernel,
        out_shape=jax.ShapeDtypeStruct((n, D_MODEL), jnp.float32),
        grid=(bs,),
        in_specs=[
            pl.BlockSpec((l_x, D_MODEL), lambda b: (b, 0)),             # x rows of batch b
            pl.BlockSpec((D_MODEL, 3 * D_MODEL), lambda b: (0, 0)),     # w_qkv (resident)
            pl.BlockSpec((1, 3 * D_MODEL), lambda b: (0, 0)),           # b_qkv
            pl.BlockSpec((D_MODEL, D_MODEL), lambda b: (0, 0)),         # w_fc
            pl.BlockSpec((1, D_MODEL), lambda b: (0, 0)),               # b_fc
            pl.BlockSpec((1, 1, l_x), lambda b: (b, 0, 0)),             # mask row of batch b
        ],
        out_specs=pl.BlockSpec((l_x, D_MODEL), lambda b: (b, 0)),
        compiler_params=pltpu.CompilerParams(
            dimension_semantics=("parallel",)),   # shard batches across TCs on v7x
    )(x2d, prep["w_qkv"], prep["b_qkv"], prep["w_fc"], prep["b_fc"], mask3)

    return out2d.reshape(bs, l_x, D_MODEL)


# ---------------- pure-JAX reference for sanity ----------------
def _reference(params, x, mask):
    bs, l_x, _ = x.shape

    def lin(name, z):
        w, b = params[name]
        return z @ w.T + b

    def proj(name):
        y = lin(name, x).reshape(bs, l_x, N_HEAD, D_K)
        return jnp.transpose(y, (2, 0, 1, 3)).reshape(N_HEAD * bs, l_x, D_K)

    q, k, v = proj("q"), proj("k"), proj("v")
    m3 = jnp.tile(jnp.broadcast_to(mask[:, None, :], (bs, l_x, l_x)), (N_HEAD, 1, 1))
    s = jnp.einsum("bld,bmd->blm", q, k) * SCALE
    s = s * (1.0 - m3) + m3 * (-1e30)
    p = jax.nn.softmax(s, axis=2)
    o = jnp.einsum("blm,bmd->bld", p, v)
    o = jnp.transpose(o.reshape(N_HEAD, bs, l_x, D_K), (1, 2, 0, 3)).reshape(bs, l_x, D_MODEL)
    return lin("fc", o)


if __name__ == "__main__":
    key = jax.random.PRNGKey(0)
    kp, kx, km = jax.random.split(key, 3)

    bs, l_x = 2, 8
    params = init_params(kp)
    prep = prepare_weights(params)   # one-time, outside the jit'd call path

    x = jax.random.normal(kx, (bs, l_x, D_MODEL), jnp.float32)
    # mask: last two positions of each sequence are masked (1.0 = masked)
    mask = jnp.zeros((bs, l_x), jnp.float32).at[:, -2:].set(1.0)

    out = multi_head_attention(prep, x, mask)
    out = jax.block_until_ready(out)

    ref = _reference(params, x, mask)
    assert out.shape == (bs, l_x, D_MODEL)
    # Tolerance covers the EUP approximate reciprocal in the softmax denominator.
    assert jnp.allclose(out, ref, atol=1e-3, rtol=1e-3), "mismatch vs reference"

    print("KERNEL_OK")
</pallas_src>

<mosaic_0001>
module attributes {stable_mosaic.version = 11 : i64} {
  func.func @_mha_kernel(%arg0: i32, %arg1: memref<8x32xf32, #tpu.memory_space<vmem>>, %arg2: memref<32x96xf32, #tpu.memory_space<vmem>>, %arg3: memref<1x96xf32, #tpu.memory_space<vmem>>, %arg4: memref<32x32xf32, #tpu.memory_space<vmem>>, %arg5: memref<1x32xf32, #tpu.memory_space<vmem>>, %arg6: memref<1x1x8xf32, #tpu.memory_space<vmem>>, %arg7: memref<8x32xf32, #tpu.memory_space<vmem>>) attributes {dimension_semantics = [#tpu.dimension_semantics<parallel>], iteration_bounds = array<i64: 2>, scalar_prefetch = 0 : i64, scratch_operands = 0 : i64, tpu.core_type = #tpu.core_type<tc>, window_params = [{transform_indices = @transform_0, window_bounds = array<i64: 8, 32>}, {pipeline_mode = #tpu.pipeline_mode<synchronous>, transform_indices = @transform_1, window_bounds = array<i64: 32, 96>}, {pipeline_mode = #tpu.pipeline_mode<synchronous>, transform_indices = @transform_2, window_bounds = array<i64: 1, 96>}, {pipeline_mode = #tpu.pipeline_mode<synchronous>, transform_indices = @transform_3, window_bounds = array<i64: 32, 32>}, {pipeline_mode = #tpu.pipeline_mode<synchronous>, transform_indices = @transform_4, window_bounds = array<i64: 1, 32>}, {transform_indices = @transform_5, window_bounds = array<i64: 1, 1, 8>}, {transform_indices = @transform_6, window_bounds = array<i64: 8, 32>}]} {
    %c0 = arith.constant 0 : index
    %c0_0 = arith.constant 0 : index
    %0 = vector.load %arg1[%c0, %c0_0] : memref<8x32xf32, #tpu.memory_space<vmem>>, vector<8x32xf32>
    %c0_1 = arith.constant 0 : index
    %c0_2 = arith.constant 0 : index
    %1 = vector.load %arg2[%c0_1, %c0_2] : memref<32x96xf32, #tpu.memory_space<vmem>>, vector<32x96xf32>
    %cst = arith.constant dense<0.000000e+00> : vector<8x96xf32>
    %2 = tpu.matmul %0, %1, %cst {dimension_numbers = #tpu.dot_dimension_numbers<[1], [0], [0], [1], [0, 0, 1, 1], [], []>} : vector<8x32xf32>, vector<32x96xf32>, vector<8x96xf32> -> vector<8x96xf32>
    %c0_3 = arith.constant 0 : index
    %c0_4 = arith.constant 0 : index
    %3 = vector.load %arg3[%c0_3, %c0_4] : memref<1x96xf32, #tpu.memory_space<vmem>>, vector<1x96xf32>
    %4 = vector.broadcast %3 : vector<1x96xf32> to vector<8x96xf32>
    %5 = arith.addf %2, %4 : vector<8x96xf32>
    %c0_5 = arith.constant 0 : index
    %c0_6 = arith.constant 0 : index
    %c0_7 = arith.constant 0 : index
    %6 = vector.load %arg6[%c0_5, %c0_6, %c0_7] : memref<1x1x8xf32, #tpu.memory_space<vmem>>, vector<1x1x8xf32>
    %7 = vector.shape_cast %6 : vector<1x1x8xf32> to vector<1x8xf32>
    %cst_8 = arith.constant 0.000000e+00 : f32
    %8 = vector.broadcast %cst_8 : f32 to vector<1x8xf32>
    %9 = arith.cmpf one, %7, %8 : vector<1x8xf32>
    %10 = vector.extract_strided_slice %5 {offsets = [0, 0], sizes = [8, 8], strides = [1, 1]} : vector<8x96xf32> to vector<8x8xf32>
    %11 = vector.extract_strided_slice %5 {offsets = [0, 32], sizes = [8, 8], strides = [1, 1]} : vector<8x96xf32> to vector<8x8xf32>
    %12 = vector.extract_strided_slice %5 {offsets = [0, 64], sizes = [8, 8], strides = [1, 1]} : vector<8x96xf32> to vector<8x8xf32>
    %cst_9 = arith.constant dense<0.000000e+00> : vector<8x8xf32>
    %13 = tpu.matmul %10, %11, %cst_9 {dimension_numbers = #tpu.dot_dimension_numbers<[1], [1], [0], [0], [0, 0, 1, 0], [], []>} : vector<8x8xf32>, vector<8x8xf32>, vector<8x8xf32> -> vector<8x8xf32>
    %cst_10 = arith.constant -1.000000e+30 : f32
    %14 = vector.shape_cast %9 : vector<1x8xi1> to vector<1x8xi1>
    %15 = vector.broadcast %14 : vector<1x8xi1> to vector<8x8xi1>
    %16 = vector.broadcast %cst_10 : f32 to vector<8x8xf32>
    %17 = arith.select %15, %16, %13 : vector<8x8xi1>, vector<8x8xf32>
    %cst_11 = arith.constant dense<0xFF800000> : vector<8xf32>
    %18 = vector.multi_reduction <maximumf>, %17, %cst_11 [1] : vector<8x8xf32> to vector<8xf32>
    %19 = vector.shape_cast %18 : vector<8xf32> to vector<8x1xf32>
    %20 = vector.broadcast %19 : vector<8x1xf32> to vector<8x8xf32>
    %21 = arith.subf %17, %20 : vector<8x8xf32>
    %22 = math.exp %21 : vector<8x8xf32>
    %cst_12 = arith.constant dense<0.000000e+00> : vector<8xf32>
    %23 = vector.multi_reduction <add>, %22, %cst_12 [1] : vector<8x8xf32> to vector<8xf32>
    %24 = vector.shape_cast %23 : vector<8xf32> to vector<8x1xf32>
    %25 = tpu.reciprocal %24 {approx = true} : vector<8x1xf32> -> vector<8x1xf32>
    %26 = vector.broadcast %25 : vector<8x1xf32> to vector<8x8xf32>
    %27 = arith.mulf %22, %26 : vector<8x8xf32>
    %cst_13 = arith.constant dense<0.000000e+00> : vector<8x8xf32>
    %28 = tpu.matmul %27, %12, %cst_13 {dimension_numbers = #tpu.dot_dimension_numbers<[1], [0], [0], [1], [0, 0, 1, 1], [], []>} : vector<8x8xf32>, vector<8x8xf32>, vector<8x8xf32> -> vector<8x8xf32>
    %c0_14 = arith.constant 0 : index
    %c0_15 = arith.constant 0 : index
    %29 = vector.load %arg4[%c0_14, %c0_15] : memref<32x32xf32, #tpu.memory_space<vmem>>, vector<8x32xf32>
    %cst_16 = arith.constant dense<0.000000e+00> : vector<8x32xf32>
    %30 = tpu.matmul %28, %29, %cst_16 {dimension_numbers = #tpu.dot_dimension_numbers<[1], [0], [0], [1], [0, 0, 1, 1], [], []>} : vector<8x8xf32>, vector<8x32xf32>, vector<8x32xf32> -> vector<8x32xf32>
    %31 = vector.extract_strided_slice %5 {offsets = [0, 8], sizes = [8, 8], strides = [1, 1]} : vector<8x96xf32> to vector<8x8xf32>
    %32 = vector.extract_strided_slice %5 {offsets = [0, 40], sizes = [8, 8], strides = [1, 1]} : vector<8x96xf32> to vector<8x8xf32>
    %33 = vector.extract_strided_slice %5 {offsets = [0, 72], sizes = [8, 8], strides = [1, 1]} : vector<8x96xf32> to vector<8x8xf32>
    %cst_17 = arith.constant dense<0.000000e+00> : vector<8x8xf32>
    %34 = tpu.matmul %31, %32, %cst_17 {dimension_numbers = #tpu.dot_dimension_numbers<[1], [1], [0], [0], [0, 0, 1, 0], [], []>} : vector<8x8xf32>, vector<8x8xf32>, vector<8x8xf32> -> vector<8x8xf32>
    %cst_18 = arith.constant -1.000000e+30 : f32
    %35 = vector.shape_cast %9 : vector<1x8xi1> to vector<1x8xi1>
    %36 = vector.broadcast %35 : vector<1x8xi1> to vector<8x8xi1>
    %37 = vector.broadcast %cst_18 : f32 to vector<8x8xf32>
    %38 = arith.select %36, %37, %34 : vector<8x8xi1>, vector<8x8xf32>
    %cst_19 = arith.constant dense<0xFF800000> : vector<8xf32>
    %39 = vector.multi_reduction <maximumf>, %38, %cst_19 [1] : vector<8x8xf32> to vector<8xf32>
    %40 = vector.shape_cast %39 : vector<8xf32> to vector<8x1xf32>
    %41 = vector.broadcast %40 : vector<8x1xf32> to vector<8x8xf32>
    %42 = arith.subf %38, %41 : vector<8x8xf32>
    %43 = math.exp %42 : vector<8x8xf32>
    %cst_20 = arith.constant dense<0.000000e+00> : vector<8xf32>
    %44 = vector.multi_reduction <add>, %43, %cst_20 [1] : vector<8x8xf32> to vector<8xf32>
    %45 = vector.shape_cast %44 : vector<8xf32> to vector<8x1xf32>
    %46 = tpu.reciprocal %45 {approx = true} : vector<8x1xf32> -> vector<8x1xf32>
    %47 = vector.broadcast %46 : vector<8x1xf32> to vector<8x8xf32>
    %48 = arith.mulf %43, %47 : vector<8x8xf32>
    %cst_21 = arith.constant dense<0.000000e+00> : vector<8x8xf32>
    %49 = tpu.matmul %48, %33, %cst_21 {dimension_numbers = #tpu.dot_dimension_numbers<[1], [0], [0], [1], [0, 0, 1, 1], [], []>} : vector<8x8xf32>, vector<8x8xf32>, vector<8x8xf32> -> vector<8x8xf32>
    %c8 = arith.constant 8 : index
    %c0_22 = arith.constant 0 : index
    %50 = vector.load %arg4[%c8, %c0_22] : memref<32x32xf32, #tpu.memory_space<vmem>>, vector<8x32xf32>
    %cst_23 = arith.constant dense<0.000000e+00> : vector<8x32xf32>
    %51 = tpu.matmul %49, %50, %cst_23 {dimension_numbers = #tpu.dot_dimension_numbers<[1], [0], [0], [1], [0, 0, 1, 1], [], []>} : vector<8x8xf32>, vector<8x32xf32>, vector<8x32xf32> -> vector<8x32xf32>
    %52 = arith.addf %30, %51 : vector<8x32xf32>
    %53 = vector.extract_strided_slice %5 {offsets = [0, 16], sizes = [8, 8], strides = [1, 1]} : vector<8x96xf32> to vector<8x8xf32>
    %54 = vector.extract_strided_slice %5 {offsets = [0, 48], sizes = [8, 8], strides = [1, 1]} : vector<8x96xf32> to vector<8x8xf32>
    %55 = vector.extract_strided_slice %5 {offsets = [0, 80], sizes = [8, 8], strides = [1, 1]} : vector<8x96xf32> to vector<8x8xf32>
    %cst_24 = arith.constant dense<0.000000e+00> : vector<8x8xf32>
    %56 = tpu.matmul %53, %54, %cst_24 {dimension_numbers = #tpu.dot_dimension_numbers<[1], [1], [0], [0], [0, 0, 1, 0], [], []>} : vector<8x8xf32>, vector<8x8xf32>, vector<8x8xf32> -> vector<8x8xf32>
    %cst_25 = arith.constant -1.000000e+30 : f32
    %57 = vector.shape_cast %9 : vector<1x8xi1> to vector<1x8xi1>
    %58 = vector.broadcast %57 : vector<1x8xi1> to vector<8x8xi1>
    %59 = vector.broadcast %cst_25 : f32 to vector<8x8xf32>
    %60 = arith.select %58, %59, %56 : vector<8x8xi1>, vector<8x8xf32>
    %cst_26 = arith.constant dense<0xFF800000> : vector<8xf32>
    %61 = vector.multi_reduction <maximumf>, %60, %cst_26 [1] : vector<8x8xf32> to vector<8xf32>
    %62 = vector.shape_cast %61 : vector<8xf32> to vector<8x1xf32>
    %63 = vector.broadcast %62 : vector<8x1xf32> to vector<8x8xf32>
    %64 = arith.subf %60, %63 : vector<8x8xf32>
    %65 = math.exp %64 : vector<8x8xf32>
    %cst_27 = arith.constant dense<0.000000e+00> : vector<8xf32>
    %66 = vector.multi_reduction <add>, %65, %cst_27 [1] : vector<8x8xf32> to vector<8xf32>
    %67 = vector.shape_cast %66 : vector<8xf32> to vector<8x1xf32>
    %68 = tpu.reciprocal %67 {approx = true} : vector<8x1xf32> -> vector<8x1xf32>
    %69 = vector.broadcast %68 : vector<8x1xf32> to vector<8x8xf32>
    %70 = arith.mulf %65, %69 : vector<8x8xf32>
    %cst_28 = arith.constant dense<0.000000e+00> : vector<8x8xf32>
    %71 = tpu.matmul %70, %55, %cst_28 {dimension_numbers = #tpu.dot_dimension_numbers<[1], [0], [0], [1], [0, 0, 1, 1], [], []>} : vector<8x8xf32>, vector<8x8xf32>, vector<8x8xf32> -> vector<8x8xf32>
    %c16 = arith.constant 16 : index
    %c0_29 = arith.constant 0 : index
    %72 = vector.load %arg4[%c16, %c0_29] : memref<32x32xf32, #tpu.memory_space<vmem>>, vector<8x32xf32>
    %cst_30 = arith.constant dense<0.000000e+00> : vector<8x32xf32>
    %73 = tpu.matmul %71, %72, %cst_30 {dimension_numbers = #tpu.dot_dimension_numbers<[1], [0], [0], [1], [0, 0, 1, 1], [], []>} : vector<8x8xf32>, vector<8x32xf32>, vector<8x32xf32> -> vector<8x32xf32>
    %74 = arith.addf %52, %73 : vector<8x32xf32>
    %75 = vector.extract_strided_slice %5 {offsets = [0, 24], sizes = [8, 8], strides = [1, 1]} : vector<8x96xf32> to vector<8x8xf32>
    %76 = vector.extract_strided_slice %5 {offsets = [0, 56], sizes = [8, 8], strides = [1, 1]} : vector<8x96xf32> to vector<8x8xf32>
    %77 = vector.extract_strided_slice %5 {offsets = [0, 88], sizes = [8, 8], strides = [1, 1]} : vector<8x96xf32> to vector<8x8xf32>
    %cst_31 = arith.constant dense<0.000000e+00> : vector<8x8xf32>
    %78 = tpu.matmul %75, %76, %cst_31 {dimension_numbers = #tpu.dot_dimension_numbers<[1], [1], [0], [0], [0, 0, 1, 0], [], []>} : vector<8x8xf32>, vector<8x8xf32>, vector<8x8xf32> -> vector<8x8xf32>
    %cst_32 = arith.constant -1.000000e+30 : f32
    %79 = vector.shape_cast %9 : vector<1x8xi1> to vector<1x8xi1>
    %80 = vector.broadcast %79 : vector<1x8xi1> to vector<8x8xi1>
    %81 = vector.broadcast %cst_32 : f32 to vector<8x8xf32>
    %82 = arith.select %80, %81, %78 : vector<8x8xi1>, vector<8x8xf32>
    %cst_33 = arith.constant dense<0xFF800000> : vector<8xf32>
    %83 = vector.multi_reduction <maximumf>, %82, %cst_33 [1] : vector<8x8xf32> to vector<8xf32>
    %84 = vector.shape_cast %83 : vector<8xf32> to vector<8x1xf32>
    %85 = vector.broadcast %84 : vector<8x1xf32> to vector<8x8xf32>
    %86 = arith.subf %82, %85 : vector<8x8xf32>
    %87 = math.exp %86 : vector<8x8xf32>
    %cst_34 = arith.constant dense<0.000000e+00> : vector<8xf32>
    %88 = vector.multi_reduction <add>, %87, %cst_34 [1] : vector<8x8xf32> to vector<8xf32>
    %89 = vector.shape_cast %88 : vector<8xf32> to vector<8x1xf32>
    %90 = tpu.reciprocal %89 {approx = true} : vector<8x1xf32> -> vector<8x1xf32>
    %91 = vector.broadcast %90 : vector<8x1xf32> to vector<8x8xf32>
    %92 = arith.mulf %87, %91 : vector<8x8xf32>
    %cst_35 = arith.constant dense<0.000000e+00> : vector<8x8xf32>
    %93 = tpu.matmul %92, %77, %cst_35 {dimension_numbers = #tpu.dot_dimension_numbers<[1], [0], [0], [1], [0, 0, 1, 1], [], []>} : vector<8x8xf32>, vector<8x8xf32>, vector<8x8xf32> -> vector<8x8xf32>
    %c24 = arith.constant 24 : index
    %c0_36 = arith.constant 0 : index
    %94 = vector.load %arg4[%c24, %c0_36] : memref<32x32xf32, #tpu.memory_space<vmem>>, vector<8x32xf32>
    %cst_37 = arith.constant dense<0.000000e+00> : vector<8x32xf32>
    %95 = tpu.matmul %93, %94, %cst_37 {dimension_numbers = #tpu.dot_dimension_numbers<[1], [0], [0], [1], [0, 0, 1, 1], [], []>} : vector<8x8xf32>, vector<8x32xf32>, vector<8x32xf32> -> vector<8x32xf32>
    %96 = arith.addf %74, %95 : vector<8x32xf32>
    %c0_38 = arith.constant 0 : index
    %c0_39 = arith.constant 0 : index
    %97 = vector.load %arg5[%c0_38, %c0_39] : memref<1x32xf32, #tpu.memory_space<vmem>>, vector<1x32xf32>
    %98 = vector.broadcast %97 : vector<1x32xf32> to vector<8x32xf32>
    %99 = arith.addf %96, %98 : vector<8x32xf32>
    %c0_40 = arith.constant 0 : index
    %c0_41 = arith.constant 0 : index
    %100 = vector.load %arg7[%c0_40, %c0_41] : memref<8x32xf32, #tpu.memory_space<vmem>>, vector<8x32xf32>
    tpu.vector_store %arg7[%c0_40, %c0_41], %99 {strides = array<i32>} : memref<8x32xf32, #tpu.memory_space<vmem>>, vector<8x32xf32>,
    return
  }
  func.func @transform_0(%arg0: i32) -> (i32, i32) {
    %c0_i32 = arith.constant 0 : i32
    %c0_i32_0 = arith.constant 0 : i32
    return %arg0, %c0_i32 : i32, i32
  }
  func.func @transform_1(%arg0: i32) -> (i32, i32) {
    %c0_i32 = arith.constant 0 : i32
    %c0_i32_0 = arith.constant 0 : i32
    %c0_i32_1 = arith.constant 0 : i32
    return %c0_i32, %c0_i32_0 : i32, i32
  }
  func.func @transform_2(%arg0: i32) -> (i32, i32) {
    %c0_i32 = arith.constant 0 : i32
    %c0_i32_0 = arith.constant 0 : i32
    %c0_i32_1 = arith.constant 0 : i32
    return %c0_i32, %c0_i32_0 : i32, i32
  }
  func.func @transform_3(%arg0: i32) -> (i32, i32) {
    %c0_i32 = arith.constant 0 : i32
    %c0_i32_0 = arith.constant 0 : i32
    %c0_i32_1 = arith.constant 0 : i32
    return %c0_i32, %c0_i32_0 : i32, i32
  }
  func.func @transform_4(%arg0: i32) -> (i32, i32) {
    %c0_i32 = arith.constant 0 : i32
    %c0_i32_0 = arith.constant 0 : i32
    %c0_i32_1 = arith.constant 0 : i32
    return %c0_i32, %c0_i32_0 : i32, i32
  }
  func.func @transform_5(%arg0: i32) -> (i32, i32, i32) {
    %c0_i32 = arith.constant 0 : i32
    %c0_i32_0 = arith.constant 0 : i32
    %c0_i32_1 = arith.constant 0 : i32
    return %arg0, %c0_i32, %c0_i32_0 : i32, i32, i32
  }
  func.func @transform_6(%arg0: i32) -> (i32, i32) {
    %c0_i32 = arith.constant 0 : i32
    %c0_i32_0 = arith.constant 0 : i32
    return %arg0, %c0_i32 : i32, i32
  }
}

</mosaic_0001>

<bundles_post_ra>
// kernel: multi_head_attention.1
= control target key start
LH: loop header
LB: loop body
LE: loop exit
PB: predicated region body
PF: predicated region fallthrough
CT: control target
= control target key end

     0   :  { %11 = vsyncpa [#allocation3], 0  ;;  %s1476_s0 = inlined_call_operand.hbm [shape: f32[16,32], index: 0, kind: input, shape index: {}]   ;;  %s1477_s1 = inlined_call_operand.hbm [shape: f32[32,96], index: 1, kind: input, shape index: {}]   ;;  %s1478_s2 = inlined_call_operand.vmem [shape: f32[1,96], index: 2, kind: input, shape index: {}]   ;;  %s1479_s3 = inlined_call_operand.hbm [shape: f32[32,32], index: 3, kind: input, shape index: {}]   ;;  %s1480_s4 = inlined_call_operand.hbm [shape: f32[1,32], index: 4, kind: input, shape index: {}]   ;;  %s1481_s5 = inlined_call_operand.vmem [shape: f32[2,1,8], index: 5, kind: input, shape index: {}]   ;;  %s1482_s6 = inlined_call_operand.hbm [shape: f32[16,32], index: 6, kind: output, shape index: {}]  }
   0x1   :  { %13 = vsyncpa [#allocation3 + $0x1], 0 }
   0x2   :  { %14 = vsyncpa [#allocation6], 0 }
   0x3   :  { %15 = vsyncpa [#allocation9], 0 }
   0x4   :  { %16 = vsyncpa [#allocation4], 0 }
   0x5   :  { %18 = vsyncpa [#allocation4 + $0x1], 0  ;;  %s1253_s21 = smov 0   ;;  %s1255_s22 = smov 0  }
   0x6   :  { %s1257_s23 = smov 0   ;;  %s1259_s24 = smov 0  }
   0x7 LB: > { %s202_s27 = sshll.u32 %s1477_s1, 4  ;;  %s1277_s28 = sadd.s32 4294967295, %s1199_s24   ;;  %s1199_s24 = sphi %s1259_s24, %s1495_s24   ;;  %s1195_s23 = sphi %s1257_s23, %s1494_s23   ;;  %s1191_s22 = sphi %s1255_s22, %s1493_s22   ;;  %s1187_s21 = sphi %s1253_s21, %s1492_s21   ;;  %s203_s27 = int_to_ptr.hbm [resolvable:$true] %s202_s27 }
   0x8   : > { %p862_p0 = scmp.ge.s32.totalorder %s1199_s24, 1  ;;  %p45_p1 = scmp.eq.s32.totalorder %s1277_s28, 0 }
   0x9   : > { %p191_p2 = scmp.lt.s32.totalorder %s1199_s24, 3  ;;  %s1201_s30 = smov [#allocation5]  }
   0xa   : > { %s204_s7 = sshll.u32 %s1201_s30, 4  ;;  %s219_s10 = sshll.u32 %s1479_s3, 4  ;;  %s205_s7 = int_to_ptr.vmem [resolvable:$true] %s204_s7  ;;  %s220_s10 = int_to_ptr.hbm [resolvable:$true] %s219_s10 }
   0xb   : > { %p1282_p3 = pnand %p862_p0, %p191_p2  ;;  %s234_s14 = sshll.u32 %s1480_s4, 4  ;;  %s235_s14 = int_to_ptr.hbm [resolvable:$true] %s234_s14 }
   0xc   : > { %s1202_s15 = smov [#allocation7]   ;;  %s1203_s17 = smov 128  }
   0xd   : > { %p912_p4 = pneg %p1282_p3  ;;  %s221_s16 = sshll.u32 %s1202_s15, 4  ;;  %s222_s16 = int_to_ptr.vmem [resolvable:$true] %s221_s16 }
   0xe   : > { %s1204_s18 = smov 8   ;;  %s1205_s19 = smov [#allocation8]  }
   0xf   : > { %p1294_p6 = pnand %p912_p4, %p45_p1  ;;  %s236_s20 = sshll.u32 %s1205_s19, 4  ;;  %s237_s20 = int_to_ptr.vmem [resolvable:$true] %s236_s20 }
  0x10   : > { %s861_s25 = sadd.s32 4294967294, %s1199_s24   ;;  %s1309_s26 = sadd.s32 1, %s1199_s24  }
  0x11   : > { %915 = dma.hbm_to_vmem [thread:$0]  (!%p1294_p6), %s203_s27, 512, %s205_s7, [#allocation6], %s1203_s17, %s1203_s17, %s1204_s18  }
  0x12   : > { %918 = dma.hbm_to_vmem [thread:$0]  (!%p1294_p6), %s220_s10, 512, %s222_s16, [#allocation6], %s1203_s17, %s1203_s17, %s1204_s18  }
  0x13   : > { %921 = dma.hbm_to_vmem [thread:$0]  (!%p1294_p6), %s235_s14, 16, %s237_s20, [#allocation9]  }
  0x14   : > { %s31_s30 = sadd.s32 1, %s1195_s23  ;;  %s28_s27 = ssub.s32 %s1199_s24, %s1309_s26 }
  0x15   : > { %p38_p7 = scmp.ne.s32.totalorder %s1195_s23, %s1191_s22  ;;  %p29_p8 = scmp.eq.s32.totalorder %s28_s27, 0 }
  0x16   : > { %p39_p9 = scmp.eq.s32.totalorder %s1199_s24, 0  ;;  %p44_p10 = scmp.ne.s32.totalorder %s1191_s22, %s1187_s21 }
  0x17   : > { %p178_p11 = scmp.eq.s32.totalorder %s1277_s28, 1  ;;  %p184_p0 = scmp.eq.s32.totalorder %s861_s25, 1 }
  0x18   : > { %s1321_s7 = scalar_select %p29_p8, %s1195_s23, %s31_s30  }
  0x19   : > { %p1325_p12 = por %p45_p1, %p44_p10  ;;  %p1329_p13 = por %p178_p11, %p38_p7 }
  0x1a   : > { %p40_p2 = por %p39_p9, %p38_p7  ;;  %s247_s10 = sand.u32 1, %s1195_s23  }
  0x1b   : > { %p1334_p4 = por %p184_p0, %p44_p10  ;;  %p933_p6 = scmp.lt.s32.totalorder %s1199_s24, 2 }
  0x1c   : > { %s867_s12 = sshll.u32 %s247_s10, 3  ;;  %s868_s13 = sshll.u32 %s1199_s24, 3 }
  0x1d   : > { %s255_s16 = scalar_lea.hbm %s1476_s0, %s868_s13  ;;  %s251_s18 = scalar_lea.vmem [#allocation2], %s867_s12 }
  0x1e   : > { %s257_s17 = sshll.u32 %s255_s16, 4  ;;  %s259_s19 = sshll.u32 %s251_s18, 4  ;;  %s258_s17 = int_to_ptr.hbm [resolvable:$true] %s257_s17  ;;  %s260_s19 = int_to_ptr.vmem [resolvable:$true] %s259_s19 }
  0x1f   : > { %p1343_p8 = pnand %p933_p6, %p40_p2  ;;  %s248_s25 = scalar_lea.sflag [#allocation3], %s247_s10 }
  0x20   : > { %s1095_s30 = sshra.s32 %s258_s17, 4  ;;  %s1102_s12 = scalar_lea.hbm %s1476_s0, 16  ;;  %s1096_s30 = int_to_ptr.hbm [resolvable:$true] %s1095_s30 }
  0x21   : > { %s1097_s27 = scalar_lea.hbm %s1096_s30, 8  ;;  %p1099_p9 = pneg %p1343_p8 }
  0x22   : > { %p1098_p7 = scmp.ne.s32.totalorder %s1096_s30, %s1097_s27  ;;  %p1103_p0 = scmp.lt.s32.totalorder %s1096_s30, %s1476_s0 }
  0x23   : > { %p1104_p2 = scmp.lt.s32.totalorder %s1102_s12, %s1097_s27 }
  0x24   : > { %p1100_p10 = pnand %p1099_p9, %p1098_p7 }
  0x25   : > { %p1105_p6 = por %p1104_p2, %p1103_p0 }
  0x26   : > { %p1101_p11 = pneg %p1100_p10 }
  0x28   : > { %p1106_p5 = pnand %p1105_p6, %p1101_p11 }
  0x2a   : > { %1109 = shalt.err (!%p1106_p5)
}
  0x2b   : > { %925 = dma.hbm_to_vmem [thread:$0]  (!%p1343_p8), %s258_s17, 128, %s260_s19, %s248_s25  }
  0x2c   : > { %274 = sbr.rel (%p1282_p3) target bundleno = 1497 (0x5d9), region = 44  ;;  %s1360_s10 = sand.u32 (!%p1282_p3), 1, %s1191_s22  }
  0x2d   : > { %s870_s18 = sshll.u32 (!%p1282_p3), %s1360_s10, 3  ;;  %s277_s13 = scalar_lea.sflag (!%p1282_p3), [#allocation3], %s1360_s10 }
  0x2e   : > { %s280_s30 = scalar_lea.vmem (!%p1282_p3), [#allocation2], %s870_s18 }
  0x31   : > { %1170 = dma.done.wait (%p1325_p12), %s277_s13, 128  }
  0x32   : > { %1172 = vsyncadd (%p1325_p12), %s277_s13, 4294967168 }
  0x33   : > { %1174 = dma.done.wait (%p45_p1), [#allocation6], 1024  }
  0x34   : > { %1176 = vsyncadd (%p45_p1), [#allocation6], 4294966272 }
  0x35   : > { %1178 = dma.done.wait (%p45_p1), [#allocation9], 16  }
  0x36   : > { %1180 = vsyncadd (%p45_p1), [#allocation9], 4294967280  ;;  %v335_v0 = vld [vmem:[#allocation5 + $0x18] sm:$0xff]  ;;  %v334_v1 = vld [vmem:[#allocation5 + $0x10] sm:$0xff]  ;;  %vm340_vm0 = vcmask 261120   ;;  %s1206_s17 = smov 88  }
  0x37   : > { %356 = vmatpush.msra.mxu0 %v335_v0  ;;  %v333_v2 = vld [vmem:[#allocation5 + $0x8] sm:$0xff]  ;;  %v332_v3 = vld [vmem:[#allocation5] sm:$0xff]  ;;  %v331_v4 = vld [vmem:[%s280_s30] sm:$0xff]  ;;  %s1207_s19 = smov 96   ;;  %s1208_s20 = smov 120   ;;  %vm369_vm1 = vcmask 64512  }
  0x38   : > { %v987_v5 = vld [vmem:[%s1478_s2] ss:$0 sm:$0xff]  ;;  %s1209_s25 = smov 72   ;;  %s1210_s27 = smov 104   ;;  %v435_v8 = vld [vmem:[#allocation7] sm:$0xff]  ;;  %v1212_v16 = vmov 0  }
  0x39   : > { %357 = vmatpush.msra.mxu0 %v334_v1  ;;  %s1211_s14 = smov 80   ;;  %p328_p1 = scmp.lt.s32.totalorder %s1277_s28, 1 }
  0x3a   : > { %s1213_s30 = smov 64   ;;  %s1214_s29 = smov 112  }
  0x3b   : > { %358 = vmatpush.msra.mxu0 %v333_v2  ;;  %s329_s12 = scalar_select %p328_p1, %s1277_s28, 1 }
  0x3c   : > { %s1215_s8 = smov 48  }
  0x3d   : > { %359 = vmatpush.msra.mxu0 %v332_v3  ;;  %s330_s13 = scalar_lea.vmem %s1481_s5, %s329_s12  ;;  %s327_s12 = scalar_lea.vmem [#allocation10], %s870_s18 }
  0x3e   : > { %875 = vmatmul.msk.f32.vlgmr.msra.gmra.mxu0 %vm340_vm0, %v331_v4  ;;  %v364_v15 = vld [vmem:[%s330_s13] sm:$0x1]  ;;  %s750_s15 = sshll.u32 %s327_s12, 4  ;;  %s1145_s18 = scalar_lea.hbm %s1482_s6, 16  ;;  %s751_s15 = int_to_ptr.vmem [resolvable:$true] %s750_s15 }
  0x3f   : > { %vm365_vm2 = vcmp.ne.f32.partialorder %v364_v15, 0.0 }
  0x40   : > { %v394_v17 = vsel %vm365_vm2, 1, %v1212_v16 }
  0x41   : > { %v395_v18 = vperm.slane %v394_v17, 0  ;;  %v988_v17 = vld [vmem:[#allocation8] ss:$0 sm:$0xff] }
  0x43   : > { %vm1402_vm3 = vcmp.eq.s32.totalorder %v395_v18, 1 }
  0xbb   : > { %v361_v6 = vpop.f32.mrf.mxu0 }
  0xbc   : > { %v1382_v7 = vadd.f32 %v987_v5, %v361_v6 }
  0xbe   : > { %438 = vrot.lane.b32.xlu2 %v1382_v7, %s1206_s17  ;;  %367 = vrot.lane.b32.xlu0 %v1382_v7, %s1207_s19  ;;  %s1216_s17 = smov 56   ;;  %s1217_s19 = smov 40  }
  0xc6   : > { %436 = vrot.lane.b32.xlu2 %v1382_v7, %s1208_s20  ;;  %s893_s20 = sshll.u32 %s1277_s28, 3  ;;  %s738_s28 = scalar_lea.sflag [#allocation4], %s1360_s10 }
  0xce   : > { %642 = vrot.lane.b32.xlu2 %v1382_v7, %s1209_s25 }
  0xd6   : > { %640 = vrot.lane.b32.xlu2 %v1382_v7, %s1210_s27 }
  0xde   : > { %551 = vrot.lane.b32.xlu2 %v1382_v7, %s1211_s14  ;;  %s748_s14 = scalar_lea.hbm %s1482_s6, %s893_s20 }
  0xdf   : > { %s752_s16 = sshll.u32 %s748_s14, 4  ;;  %s753_s16 = int_to_ptr.hbm [resolvable:$true] %s752_s16 }
  0xe0   : > { %s1139_s13 = sshra.s32 %s753_s16, 4  ;;  %s1140_s13 = int_to_ptr.hbm [resolvable:$true] %s1139_s13 }
  0xe1   : > { %p1146_p8 = scmp.lt.s32.totalorder %s1140_s13, %s1482_s6 }
 0x118   : > { %v439_v9 = vpop.permute.xlu2 %438 }
 0x119   : > { %879 = vmatpush.xpose.msk.msra.mxu3 %vm369_vm1, %v439_v9  ;;  %v615_v9 = vld [vmem:[#allocation7 + $0x10] sm:$0xff] }
 0x11d   : > { %544 = vmatpush.msrb.mxu3 %v435_v8  ;;  %v502_v8 = vld [vmem:[#allocation7 + $0x8] sm:$0xff] }
 0x120   : > { %v437_v10 = vpop.permute.xlu2 %436 }
 0x121   : > { %880 = vmatmul.msk.f32.vlgmr.msra.gmra.mxu3 %vm369_vm1, %v437_v10 }
 0x128   : > { %v643_v11 = vpop.permute.xlu2 %642 }
 0x129   : > { %888 = vmatpush.xpose.msk.msra.mxu3 %vm369_vm1, %v643_v11  ;;  %v706_v11 = vld [vmem:[#allocation7 + $0x18] sm:$0xff] }
 0x130   : > { %v641_v12 = vpop.permute.xlu2 %640  ;;  %v368_v13 = vpop.permute.xlu0 %367 }
 0x131   : > { %876 = vmatpush.xpose.msk.msra.mxu1 %vm369_vm1, %v368_v13 }
 0x134   : > { %877 = vmatmul.msk.f32.vlgmr.msra.gmra.mxu1 %vm369_vm1, %v1382_v7 }
 0x135   : > { %521 = vmatpush.msrb.mxu1 %v502_v8 }
 0x137   : > { %634 = vmatpush.msra.mxu1 %v615_v9 }
 0x138   : > { %v552_v14 = vpop.permute.xlu2 %551 }
 0x139   : > { %884 = vmatpush.xpose.msk.msrb.mxu0 %vm369_vm1, %v552_v14 }
 0x1a4   : > { %v461_v20 = vpop.f32.mrf.mxu3 }
 0x1a5   : > { %v464_v21 = vsel %vm1402_vm3, -1e+30, %v461_v20 }
 0x1a6   : > { %v465_v22 = vsel %vm369_vm1, %v464_v21, -inf }
 0x1a7   : > { %466 = vmax.xlane.f32.xlu2 %v465_v22 }
 0x1b1   : > { %v391_v23 = vpop.f32.mrf.mxu1 }
 0x1b2   : > { %v397_v24 = vsel %vm1402_vm3, -1e+30, %v391_v23 }
 0x1b3   : > { %v398_v25 = vsel %vm369_vm1, %v397_v24, -inf }
 0x1b4   : > { %399 = vmax.xlane.f32.xlu0 %v398_v25 }
 0x21a   : > { %v467_v40 = vpop.xlane.xlu2 %466 }
 0x21b   : > { %v468_v42 = vsub.f32 %v464_v21, %v467_v40 }
 0x21d   : > { %v469_v43 = vmul.f32 1.442695, %v468_v42 }
 0x227   : > { %v400_v26 = vpop.xlane.xlu0 %399 }
 0x228   : > { %v401_v27 = vsub.f32 %v397_v24, %v400_v26 }
 0x22a   : > { %v402_v28 = vmul.f32 1.442695, %v401_v27 }
 0x22c   : > { %989 = vpow2.f32 %v402_v28 }
 0x232   : > { %v990_v29 = vpop.eup %989 }
 0x233   : > { %v404_v30 = vsel %vm369_vm1, %v990_v29, 0.0 }
 0x234   : > { %405 = vadd.xlane.f32.xlu1 %v404_v30 }
 0x24d   : > { %409 = vrot.lane.b32.xlu1 %v1382_v7, %s1213_s30  ;;  %s1141_s30 = scalar_lea.hbm %s1140_s13, 8 }
 0x24e   : > { %p1142_p3 = scmp.ne.s32.totalorder %s1140_s13, %s1141_s30  ;;  %p1147_p7 = scmp.lt.s32.totalorder %s1145_s18, %s1141_s30 }
 0x250   : > { %p1143_p5 = pnand %p1142_p3, %p1329_p13  ;;  %p1148_p9 = por %p1147_p7, %p1146_p8 }
 0x252   : > { %p1144_p12 = pneg %p1143_p5 }
 0x254   : > { %p1149_p10 = pnand %p1148_p9, %p1144_p12 }
 0x255   : > { %549 = vrot.lane.b32.xlu1 %v1382_v7, %s1214_s29 }
 0x2a7   : > { %v406_v31 = vpop.xlane.xlu1 %405 }
 0x2a8   : > { %991 = vrcp.f32 %v406_v31 }
 0x2a9   : > { %993 = vpow2.f32 %v469_v43 }
 0x2ae   : > { %v992_v32 = vpop.eup %991 }
 0x2af   : > { %v408_v34 = vmul.f32 %v992_v32, %v990_v29  ;;  %v994_v50 = vpop.eup %993 }
 0x2b0   : > { %v471_v51 = vsel %vm369_vm1, %v994_v50, 0.0 }
 0x2bf   : > { %v410_v33 = vpop.permute.xlu1 %409 }
 0x2c0   : > { %430 = vmatpush.msra.mxu2 %v410_v33 }
 0x2c1   : > { %878 = vmatmul.msk.f32.vlgmr.msra.gmra.mxu2 %vm369_vm1, %v408_v34 }
 0x2c7   : > { %v550_v35 = vpop.permute.xlu1 %549 }
 0x2c8   : > { %885 = vmatmul.msk.f32.vlgmr.msrb.gmra.mxu0 %vm369_vm1, %v550_v35 }
 0x344   : > { %v432_v36 = vpop.f32.mrf.mxu2 }
 0x345   : > { %883 = vmatmul.msk.f32.vlgmr.msrb.gmra.mxu3 %vm369_vm1, %v432_v36  ;;  %v574_v37 = vpop.f32.mrf.mxu0 }
 0x346   : > { %v577_v38 = vsel %vm1402_vm3, -1e+30, %v574_v37 }
 0x347   : > { %v578_v39 = vsel %vm369_vm1, %v577_v38, -inf }
 0x348   : > { %579 = vmax.xlane.f32.xlu1 %v578_v39 }
 0x34d   : > { %889 = vmatmul.msk.f32.vlgmr.msra.gmra.mxu3 %vm369_vm1, %v641_v12 }
 0x361   : > { %589 = vrot.lane.b32.xlu1 %v1382_v7, %s1215_s8 }
 0x3bb   : > { %v580_v44 = vpop.xlane.xlu1 %579 }
 0x3bc   : > { %v581_v46 = vsub.f32 %v577_v38, %v580_v44 }
 0x3be   : > { %v582_v49 = vmul.f32 1.442695, %v581_v46 }
 0x3c0   : > { %995 = vpow2.f32 %v582_v49 }
 0x3c6   : > { %v996_v52 = vpop.eup %995 }
 0x3c7   : > { %v584_v53 = vsel %vm369_vm1, %v996_v52, 0.0 }
 0x3c8   : > { %v1423_v41 = vpop.f32.mrf.mxu3 }
 0x3d0   : > { %v665_v45 = vpop.f32.mrf.mxu3 }
 0x3d1   : > { %v668_v47 = vsel %vm1402_vm3, -1e+30, %v665_v45 }
 0x3d2   : > { %v669_v48 = vsel %vm369_vm1, %v668_v47, -inf }
 0x3d3   : > { %670 = vmax.xlane.f32.xlu0 %v669_v48  ;;  %v590_v0 = vpop.permute.xlu1 %589 }
 0x3db   : > { %472 = vadd.xlane.f32.xlu0 %v471_v51 }
 0x3e3   : > { %585 = vadd.xlane.f32.xlu0 %v584_v53 }
 0x3f7   : > { %476 = vrot.lane.b32.xlu0 %v1382_v7, %s1216_s17 }
 0x446   : > { %v671_v54 = vpop.xlane.xlu0 %670 }
 0x447   : > { %v672_v55 = vsub.f32 %v668_v47, %v671_v54 }
 0x449   : > { %v673_v56 = vmul.f32 1.442695, %v672_v55 }
 0x44b   : > { %997 = vpow2.f32 %v673_v56 }
 0x44e   : > { %v473_v59 = vpop.xlane.xlu0 %472 }
 0x44f   : > { %999 = vrcp.f32 %v473_v59 }
 0x451   : > { %v998_v57 = vpop.eup %997 }
 0x452   : > { %v675_v58 = vsel %vm369_vm1, %v998_v57, 0.0 }
 0x453   : > { %676 = vadd.xlane.f32.xlu2 %v675_v58 }
 0x455   : > { %v1000_v61 = vpop.eup %999 }
 0x456   : > { %v586_v60 = vpop.xlane.xlu0 %585  ;;  %v475_v63 = vmul.f32 %v1000_v61, %v994_v50 }
 0x457   : > { %1001 = vrcp.f32 %v586_v60 }
 0x45d   : > { %v1002_v1 = vpop.eup %1001 }
 0x45e   : > { %v588_v2 = vmul.f32 %v1002_v1, %v996_v52 }
 0x469   : > { %v477_v62 = vpop.permute.xlu0 %476 }
 0x46a   : > { %497 = vmatpush.msrb.mxu2 %v477_v62 }
 0x46b   : > { %680 = vrot.lane.b32.xlu2 %v1382_v7, %s1217_s19  ;;  %881 = vmatmul.msk.f32.vlgmr.msrb.gmra.mxu2 %vm369_vm1, %v475_v63 }
 0x46c   : > { %610 = vmatpush.msra.mxu2 %v590_v0 }
 0x46e   : > { %725 = vmatpush.msrb.mxu2 %v706_v11 }
 0x473   : > { %886 = vmatmul.msk.f32.vlgmr.msra.gmra.mxu2 %vm369_vm1, %v588_v2 }
 0x4c6   : > { %v677_v3 = vpop.xlane.xlu2 %676 }
 0x4c7   : > { %1003 = vrcp.f32 %v677_v3 }
 0x4cd   : > { %v1004_v4 = vpop.eup %1003 }
 0x4ce   : > { %v679_v5 = vmul.f32 %v1004_v4, %v998_v57  ;;  %v681_v6 = vpop.permute.xlu2 %680 }
 0x4cf   : > { %701 = vmatpush.msra.mxu0 %v681_v6 }
 0x4d0   : > { %890 = vmatmul.msk.f32.vlgmr.msra.gmra.mxu0 %vm369_vm1, %v679_v5 }
 0x4ee   : > { %v499_v7 = vpop.f32.mrf.mxu2 }
 0x4ef   : > { %882 = vmatmul.msk.f32.vlgmr.msrb.gmra.mxu1 %vm369_vm1, %v499_v7 }
 0x4f6   : > { %v612_v10 = vpop.f32.mrf.mxu2 }
 0x4f7   : > { %887 = vmatmul.msk.f32.vlgmr.msra.gmra.mxu1 %vm369_vm1, %v612_v10 }
 0x54d   : > { %v703_v12 = vpop.f32.mrf.mxu0 }
 0x54e   : > { %891 = vmatmul.msk.f32.vlgmr.msrb.gmra.mxu2 %vm369_vm1, %v703_v12 }
 0x56c   : > { %v523_v13 = vpop.f32.mrf.mxu1 }
 0x56d   : > { %v547_v15 = vadd.f32 %v1423_v41, %v523_v13 }
 0x574   : > { %v636_v14 = vpop.f32.mrf.mxu1 }
 0x575   : > { %v639_v16 = vadd.f32 %v636_v14, %v547_v15 }
 0x5d1   : > { %v727_v18 = vpop.f32.mrf.mxu2 }
 0x5d2   : > { %v730_v19 = vadd.f32 %v727_v18, %v639_v16 }
 0x5d4   : > { %v735_v20 = vadd.f32 %v988_v17, %v730_v19 }
 0x5d6   : > { %736 = vst.msk [vmem:[%s327_s12] sm:$0xff] %vm340_vm0, %v735_v20 }
 0x5d7   : > { %1152 = shalt.err (!%p1149_p10)
}
 0x5d8   : > { %910 = dma.vmem_to_hbm [thread:$0]  (%p1329_p13), %s751_s15, 128, %s753_s16, %s738_s28  }
 0x5d9 PF: > { %s764_s10 = sand.u32 1, %s1187_s21   ;;  %p1491_p11 = scmp.ge.s32.totalorder %s1199_s24, 2 }
 0x5da   : > { %s765_s20 = scalar_lea.sflag [#allocation4], %s764_s10 }
 0x5db   : > { %p927_p0 = pnand %p1491_p11, %p1334_p4 }
 0x5dd   : > { %p928_p2 = pneg %p927_p0 }
 0x5df   : > { %1182 = dma.done.wait (%p928_p2), %s765_s20, 128  }
 0x5e0   : > { %1184 = vsyncadd (%p928_p2), %s765_s20, 4294967168  ;;  %p21_p6 = scmp.ge.s32.totalorder %s1309_s26, 4   ;;  %s1492_s21 = smov %s1191_s22 }
 0x5e1   : > { %s1493_s22 = smov %s1195_s23  ;;  %s1494_s23 = smov %s1321_s7 }
 0x5e2   : > { %s1495_s24 = smov %s1309_s26  ;;  %23 = sbr.rel (!%p21_p6) target bundleno = 7 (0x7), region = 104 }
 0x5e7   :  { %771 = vsyncpa [#allocation3], 1 }
 0x5e8   :  { %773 = vsyncpa [#allocation3 + $0x1], 1 }
 0x5e9   :  { %774 = vsyncpa [#allocation6], 1 }
 0x5ea   :  { %775 = vsyncpa [#allocation9], 1 }
 0x5eb   :  { %776 = vsyncpa [#allocation4], 1 }
 0x5ec   :  { %778 = vsyncpa [#allocation4 + $0x1], 1 }

</bundles_post_ra>
